<compile_context>
chip_gen: v7x
topology: tpu7x:2x2x1
jax: 0.10.0
libtpu: 0.0.40
codegen_flags: <defaults>
</compile_context>

<pallas_src>
import functools
import math

import jax
import jax.numpy as jnp
from jax import lax
from jax.experimental import pallas as pl
from jax.experimental.pallas import tpu as pltpu


def _warp_kernel(aff_ref, x_ref, o_ref, *, H, W, slab, G):
    HW = H * W
    b = pl.program_id(0)          # image-group index
    j = pl.program_id(1)          # output-pixel slab index

    pow2 = (W & (W - 1)) == 0
    log2w = max(W.bit_length() - 1, 0)

    # ---- image-independent coordinates: tiny 1-D layouts only --------------
    # output pixel (row, col) as (1, slab) lane rows
    p = j * slab + lax.broadcasted_iota(jnp.int32, (1, slab), 1)
    if pow2:
        oyi = jnp.right_shift(p, log2w)
        oxi = jnp.bitwise_and(p, W - 1)
    else:
        oyi = p // W
        oxi = p - oyi * W
    oy = oyi.astype(jnp.float32)                                  # (1, slab)
    ox = oxi.astype(jnp.float32)                                  # (1, slab)

    # source row / col coordinates as (H, 1) / (W, 1) sublane columns
    ry = lax.broadcasted_iota(jnp.int32, (H, 1), 0).astype(jnp.float32)
    rx = lax.broadcasted_iota(jnp.int32, (W, 1), 0).astype(jnp.float32)

    def body(g, carry):
        base = (b * G + g) * 6
        m0 = aff_ref[base + 0]
        m1 = aff_ref[base + 1]
        m2 = aff_ref[base + 2]
        m3 = aff_ref[base + 3]
        m4 = aff_ref[base + 4]
        m5 = aff_ref[base + 5]

        # inverse affine (output coords -> source coords), [y, x] convention
        sy = m0 * oy + m1 * ox + m2                               # (1, slab) f32
        sx = m3 * oy + m4 * ox + m5                               # (1, slab) f32

        # Separable bilinear tents: only (H+W)*slab elems of f32 VPU work.
        # Out-of-range taps get zero weight => zero padding (pad-crop / warp).
        # Weights live in [0,1] -> bf16-safe; the single full-tile op (the
        # outer-product multiply) runs packed bf16 and feeds the MXU natively.
        wy = jnp.maximum(0.0, 1.0 - jnp.abs(sy - ry)).astype(jnp.bfloat16)  # (H, slab)
        wx = jnp.maximum(0.0, 1.0 - jnp.abs(sx - rx)).astype(jnp.bfloat16)  # (W, slab)
        # (H, 1, slab) * (1, W, slab) -> (H, W, slab) -> (HW, slab), layout-free
        mt = (wy[:, None, :] * wx[None, :, :]).reshape(HW, slab)

        img = x_ref[g]                                            # (C, HW) bf16
        o_ref[g] = jnp.dot(img, mt, preferred_element_type=jnp.float32)
        return carry

    lax.fori_loop(0, G, body, 0, unroll=True)


def _compose_inverse_affines(key, N, H, W, pad, max_deg, use_flip):
    """Per-image flattened 2x3 inverse affine (output -> source) on [y, x, 1]."""
    kc, ko, kr, ka, kf = jax.random.split(key, 5)
    cy = (H - 1) / 2.0
    cx = (W - 1) / 2.0

    # ProbTransform(RandomCrop((H, W), padding=pad), p=0.8):
    # batch-level gate (one random.random() per forward), per-image offsets.
    gate_crop = jax.random.uniform(kc) < 0.8
    offs = jax.random.randint(ko, (N, 2), -pad, pad + 1).astype(jnp.float32)
    dy = jnp.where(gate_crop, offs[:, 0], 0.0)
    dx = jnp.where(gate_crop, offs[:, 1], 0.0)

    # ProbTransform(RandomRotation(max_deg), p=0.5): batch gate, per-image angle.
    gate_rot = jax.random.uniform(kr) < 0.5
    deg = jax.random.uniform(ka, (N,), minval=-max_deg, maxval=max_deg)
    # Sampling (inverse) map of a forward rotation by +theta uses -theta.
    theta = -jnp.where(gate_rot, deg, 0.0) * (math.pi / 180.0)

    # RandomHorizontalFlip(p=0.5): per-image decision (cifar10 only).
    if use_flip:
        flip = jax.random.uniform(kf, (N,)) < 0.5
    else:
        flip = jnp.zeros((N,), dtype=bool)

    def compose(dy_i, dx_i, th_i, fl_i):
        c = jnp.cos(th_i)
        s = jnp.sin(th_i)
        eye = jnp.eye(3, dtype=jnp.float32)
        m_crop = eye.at[0, 2].set(dy_i).at[1, 2].set(dx_i)      # shift (sampling map of pad+crop)
        m_rot = jnp.stack([
            jnp.stack([c, -s, cy - c * cy + s * cx]),
            jnp.stack([s, c, cx - s * cy - c * cx]),
            jnp.array([0.0, 0.0, 1.0], jnp.float32),
        ])                                                      # rotation about image center
        f = jnp.where(fl_i, -1.0, 1.0)
        tx = jnp.where(fl_i, float(W - 1), 0.0)
        m_flip = jnp.stack([
            jnp.array([1.0, 0.0, 0.0], jnp.float32),
            jnp.stack([jnp.float32(0.0), f, tx]),
            jnp.array([0.0, 0.0, 1.0], jnp.float32),
        ])                                                      # horizontal mirror (self-inverse)
        # sampling composite for forward crop -> rotate -> flip:
        #   p_src = crop_shift( rot^{-1}( flip^{-1}( p_out ) ) )
        return m_crop @ m_rot @ m_flip

    mats = jax.vmap(compose)(dy, dx, theta, flip)               # (N, 3, 3)
    # flatten to 1-D for SMEM (2-D (N,6) SMEM would pad to (ceil(N/8)*8, 128))
    return mats[:, :2, :].reshape(N * 6).astype(jnp.float32)


def _choose_slab(HW):
    """Full-HW slab whenever bf16 mt + its rank-3 intermediate fit ~12 MiB."""
    budget = 12 << 20
    if 4 * HW * HW <= budget:
        return HW
    best = None
    cand = 256
    while cand <= HW:
        if HW % cand == 0 and 4 * HW * cand <= budget:
            best = cand
        cand *= 2
    return best if best is not None else HW


def _choose_group(N):
    """Images per grid step; keep >= 2 steps on the 'parallel' axis for v7x."""
    for g in (8, 4, 2):
        if N % g == 0 and (N // g) >= 2:
            return g
    return 1


def post_tensor_transform(x, key, *, random_crop_pad=2, random_rotation_deg=10.0,
                          dataset="cifar10"):
    """JAX/Pallas equivalent of PostTensorTransform.forward.  x: NCHW float32."""
    N, C, H, W = x.shape
    HW = H * W
    slab = _choose_slab(HW)
    n_slabs = HW // slab
    G = _choose_group(N)

    # TODO(synk): Python random.random() / kornia's RNG stream cannot be
    # replicated bit-exactly; randomness is re-sampled deterministically with
    # jax.random from `key` (same distributions, same batch/per-image gating).
    aff = _compose_inverse_affines(key, N, H, W, random_crop_pad,
                                   random_rotation_deg, dataset == "cifar10")
    # bf16 image: halves the HBM->VMEM input DMA, native MXU dtype, and the
    # (C, HW) block stays resident across slab iterations without re-casting.
    x_flat = x.reshape(N, C, HW).astype(jnp.bfloat16)

    kernel = functools.partial(_warp_kernel, H=H, W=W, slab=slab, G=G)

    # VMEM budget: bf16 mt + rank-3 intermediate, small f32 coordinate rows,
    # double-buffered bf16 input / f32 output blocks, compiler headroom.
    mt_bytes = 2 * HW * slab * 2
    row_bytes = 6 * (H + W) * slab * 4
    io_bytes = 2 * G * C * HW * 2 + 2 * G * C * slab * 4
    needed = mt_bytes + row_bytes + io_bytes + (4 << 20)
    # Stay well under v7x's 64 MiB/TC; never below the 32 MiB platform default.
    vmem_limit = int(min(48 << 20, max(32 << 20, needed)))

    cost = pl.CostEstimate(
        flops=2 * N * C * HW * HW                      # MXU warp matmul
              + N * (8 * (H + W) * HW + HW * HW),      # VPU tent build (dominant)
        transcendentals=0,
        bytes_accessed=N * C * HW * (2 + 4) + N * 6 * 4,
    )

    # TODO(synk): emit bf16 output (out_shape dtype) if the downstream training
    # step consumes bf16 activations; kept f32 to match the module's dtype.
    out_flat = pl.pallas_call(
        kernel,
        grid=(N // G, n_slabs),
        in_specs=[
            pl.BlockSpec(memory_space=pltpu.MemorySpace.SMEM),         # (N*6,) affines
            pl.BlockSpec((G, C, HW), lambda b, j: (b, 0, 0)),          # G images, resident across slabs
        ],
        out_specs=pl.BlockSpec((G, C, slab), lambda b, j: (b, 0, j)),  # lane-dense output slab
        out_shape=jax.ShapeDtypeStruct((N, C, HW), jnp.float32),
        compiler_params=pltpu.CompilerParams(
            dimension_semantics=("parallel", "arbitrary"),
            vmem_limit_bytes=vmem_limit),
        cost_estimate=cost,
    )(aff, x_flat)
    return out_flat.reshape(N, C, H, W)


if __name__ == "__main__":
    key = jax.random.PRNGKey(0)
    k_x, k_aug = jax.random.split(key)
    N, C, H, W = 2, 4, 16, 16
    x = jax.random.uniform(k_x, (N, C, H, W), dtype=jnp.float32)
    y = post_tensor_transform(x, k_aug, random_crop_pad=2,
                              random_rotation_deg=10.0, dataset="cifar10")
    jax.block_until_ready(y)
    assert y.shape == x.shape and y.dtype == jnp.float32
    assert bool(jnp.all(jnp.isfinite(y)))
    print("KERNEL_OK")
</pallas_src>

<mosaic_0001>
module attributes {stable_mosaic.version = 11 : i64} {
  func.func @_warp_kernel(%arg0: i32, %arg1: i32, %arg2: memref<12xf32, #tpu.memory_space<smem>>, %arg3: memref<1x4x256xbf16, #tpu.memory_space<vmem>>, %arg4: memref<1x4x256xf32, #tpu.memory_space<vmem>>) attributes {dimension_semantics = [#tpu.dimension_semantics<parallel>, #tpu.dimension_semantics<arbitrary>], iteration_bounds = array<i64: 2, 1>, scalar_prefetch = 0 : i64, scratch_operands = 0 : i64, tpu.core_type = #tpu.core_type<tc>, window_params = [{transform_indices = @transform_0, window_bounds = array<i64: 12>}, {transform_indices = @transform_1, window_bounds = array<i64: 1, 4, 256>}, {transform_indices = @transform_2, window_bounds = array<i64: 1, 4, 256>}]} {
    %c256_i32 = arith.constant 256 : i32
    %0 = arith.muli %arg1, %c256_i32 : i32
    %1 = tpu.iota {dimensions = array<i32: 1>} : vector<1x256xi32>
    %2 = vector.broadcast %0 : i32 to vector<1x256xi32>
    %3 = arith.addi %2, %1 : vector<1x256xi32>
    %c4_i32 = arith.constant 4 : i32
    %4 = vector.broadcast %c4_i32 : i32 to vector<1x256xi32>
    %5 = arith.shrsi %3, %4 : vector<1x256xi32>
    %c15_i32 = arith.constant 15 : i32
    %6 = vector.broadcast %c15_i32 : i32 to vector<1x256xi32>
    %7 = arith.andi %3, %6 : vector<1x256xi32>
    %8 = arith.sitofp %5 : vector<1x256xi32> to vector<1x256xf32>
    %9 = arith.sitofp %7 : vector<1x256xi32> to vector<1x256xf32>
    %10 = tpu.iota {dimensions = array<i32: 0>} : vector<16x1xi32>
    %11 = arith.sitofp %10 : vector<16x1xi32> to vector<16x1xf32>
    %12 = tpu.iota {dimensions = array<i32: 0>} : vector<16x1xi32>
    %13 = arith.sitofp %12 : vector<16x1xi32> to vector<16x1xf32>
    %c0_i32 = arith.constant 0 : i32
    %c1_i32 = arith.constant 1 : i32
    %14 = arith.muli %arg0, %c1_i32 : i32
    %15 = arith.addi %14, %c0_i32 : i32
    %c6_i32 = arith.constant 6 : i32
    %16 = arith.muli %15, %c6_i32 : i32
    %c0_i32_0 = arith.constant 0 : i32
    %17 = arith.addi %16, %c0_i32_0 : i32
    %18 = arith.index_cast %17 : i32 to index
    %19 = memref.load %arg2[%18] : memref<12xf32, #tpu.memory_space<smem>>
    %c1_i32_1 = arith.constant 1 : i32
    %20 = arith.addi %16, %c1_i32_1 : i32
    %21 = arith.index_cast %20 : i32 to index
    %22 = memref.load %arg2[%21] : memref<12xf32, #tpu.memory_space<smem>>
    %c2_i32 = arith.constant 2 : i32
    %23 = arith.addi %16, %c2_i32 : i32
    %24 = arith.index_cast %23 : i32 to index
    %25 = memref.load %arg2[%24] : memref<12xf32, #tpu.memory_space<smem>>
    %c3_i32 = arith.constant 3 : i32
    %26 = arith.addi %16, %c3_i32 : i32
    %27 = arith.index_cast %26 : i32 to index
    %28 = memref.load %arg2[%27] : memref<12xf32, #tpu.memory_space<smem>>
    %c4_i32_2 = arith.constant 4 : i32
    %29 = arith.addi %16, %c4_i32_2 : i32
    %30 = arith.index_cast %29 : i32 to index
    %31 = memref.load %arg2[%30] : memref<12xf32, #tpu.memory_space<smem>>
    %c5_i32 = arith.constant 5 : i32
    %32 = arith.addi %16, %c5_i32 : i32
    %33 = arith.index_cast %32 : i32 to index
    %34 = memref.load %arg2[%33] : memref<12xf32, #tpu.memory_space<smem>>
    %35 = vector.broadcast %19 : f32 to vector<1x256xf32>
    %36 = arith.mulf %35, %8 : vector<1x256xf32>
    %37 = vector.broadcast %22 : f32 to vector<1x256xf32>
    %38 = arith.mulf %37, %9 : vector<1x256xf32>
    %39 = arith.addf %36, %38 : vector<1x256xf32>
    %40 = vector.broadcast %25 : f32 to vector<1x256xf32>
    %41 = arith.addf %39, %40 : vector<1x256xf32>
    %42 = vector.broadcast %28 : f32 to vector<1x256xf32>
    %43 = arith.mulf %42, %8 : vector<1x256xf32>
    %44 = vector.broadcast %31 : f32 to vector<1x256xf32>
    %45 = arith.mulf %44, %9 : vector<1x256xf32>
    %46 = arith.addf %43, %45 : vector<1x256xf32>
    %47 = vector.broadcast %34 : f32 to vector<1x256xf32>
    %48 = arith.addf %46, %47 : vector<1x256xf32>
    %49 = vector.broadcast %41 : vector<1x256xf32> to vector<16x256xf32>
    %50 = vector.broadcast %11 : vector<16x1xf32> to vector<16x256xf32>
    %51 = arith.subf %49, %50 : vector<16x256xf32>
    %52 = math.absf %51 : vector<16x256xf32>
    %cst = arith.constant 1.000000e+00 : f32
    %53 = vector.broadcast %cst : f32 to vector<16x256xf32>
    %54 = arith.subf %53, %52 : vector<16x256xf32>
    %cst_3 = arith.constant 0.000000e+00 : f32
    %55 = vector.broadcast %cst_3 : f32 to vector<16x256xf32>
    %56 = arith.maximumf %55, %54 : vector<16x256xf32>
    %57 = arith.truncf %56 : vector<16x256xf32> to vector<16x256xbf16>
    %58 = vector.broadcast %48 : vector<1x256xf32> to vector<16x256xf32>
    %59 = vector.broadcast %13 : vector<16x1xf32> to vector<16x256xf32>
    %60 = arith.subf %58, %59 : vector<16x256xf32>
    %61 = math.absf %60 : vector<16x256xf32>
    %cst_4 = arith.constant 1.000000e+00 : f32
    %62 = vector.broadcast %cst_4 : f32 to vector<16x256xf32>
    %63 = arith.subf %62, %61 : vector<16x256xf32>
    %cst_5 = arith.constant 0.000000e+00 : f32
    %64 = vector.broadcast %cst_5 : f32 to vector<16x256xf32>
    %65 = arith.maximumf %64, %63 : vector<16x256xf32>
    %66 = arith.truncf %65 : vector<16x256xf32> to vector<16x256xbf16>
    %67 = vector.shape_cast %57 : vector<16x256xbf16> to vector<16x1x256xbf16>
    %68 = vector.shape_cast %66 : vector<16x256xbf16> to vector<1x16x256xbf16>
    %69 = vector.broadcast %67 : vector<16x1x256xbf16> to vector<16x16x256xbf16>
    %70 = vector.broadcast %68 : vector<1x16x256xbf16> to vector<16x16x256xbf16>
    %71 = arith.mulf %69, %70 : vector<16x16x256xbf16>
    %72 = vector.shape_cast %71 : vector<16x16x256xbf16> to vector<256x256xbf16>
    %73 = arith.index_cast %c0_i32 : i32 to index
    %c0 = arith.constant 0 : index
    %c0_6 = arith.constant 0 : index
    %74 = vector.load %arg3[%73, %c0, %c0_6] : memref<1x4x256xbf16, #tpu.memory_space<vmem>>, vector<1x4x256xbf16>
    %75 = vector.shape_cast %74 : vector<1x4x256xbf16> to vector<4x256xbf16>
    %cst_7 = arith.constant dense<0.000000e+00> : vector<4x256xf32>
    %76 = tpu.matmul %75, %72, %cst_7 {dimension_numbers = #tpu.dot_dimension_numbers<[1], [0], [0], [1], [0, 0, 1, 1], [], []>} : vector<4x256xbf16>, vector<256x256xbf16>, vector<4x256xf32> -> vector<4x256xf32>
    %77 = arith.index_cast %c0_i32 : i32 to index
    %c0_8 = arith.constant 0 : index
    %c0_9 = arith.constant 0 : index
    %78 = vector.load %arg4[%77, %c0_8, %c0_9] : memref<1x4x256xf32, #tpu.memory_space<vmem>>, vector<1x4x256xf32>
    %79 = vector.shape_cast %78 : vector<1x4x256xf32> to vector<4x256xf32>
    %80 = vector.shape_cast %76 : vector<4x256xf32> to vector<1x4x256xf32>
    tpu.vector_store %arg4[%77, %c0_8, %c0_9], %80 {strides = array<i32>} : memref<1x4x256xf32, #tpu.memory_space<vmem>>, vector<1x4x256xf32>,
    %c1_i32_10 = arith.constant 1 : i32
    return
  }
  func.func @transform_0(%arg0: i32, %arg1: i32) -> i32 {
    %c0_i32 = arith.constant 0 : i32
    %c0_i32_0 = arith.constant 0 : i32
    return %c0_i32 : i32
  }
  func.func @transform_1(%arg0: i32, %arg1: i32) -> (i32, i32, i32) {
    %c0_i32 = arith.constant 0 : i32
    %c0_i32_0 = arith.constant 0 : i32
    %c0_i32_1 = arith.constant 0 : i32
    return %arg0, %c0_i32, %c0_i32_0 : i32, i32, i32
  }
  func.func @transform_2(%arg0: i32, %arg1: i32) -> (i32, i32, i32) {
    %c0_i32 = arith.constant 0 : i32
    %c0_i32_0 = arith.constant 0 : i32
    return %arg0, %c0_i32, %arg1 : i32, i32, i32
  }
}

</mosaic_0001>

<bundles_post_ra>
// kernel: tpu_custom_call.1
= control target key start
LH: loop header
LB: loop body
LE: loop exit
PB: predicated region body
PF: predicated region fallthrough
CT: control target
= control target key end

     0   :  { %7 = vsyncpa [#allocation5], 0  ;;  %s1525_s0 = inlined_call_operand.hbm [shape: f32[12], index: 0, kind: input, shape index: {}]   ;;  %s1526_s1 = inlined_call_operand.hbm [shape: bf16[2,4,256], index: 1, kind: input, shape index: {}]   ;;  %s1527_s2 = inlined_call_operand.hbm [shape: f32[2,4,256], index: 2, kind: output, shape index: {}]  }
   0x1   :  { %8 = vsyncpa [#allocation3], 0 }
   0x2   :  { %10 = vsyncpa [#allocation3 + $0x1], 0 }
   0x3   :  { %11 = vsyncpa [#allocation4], 0 }
   0x4   :  { %13 = vsyncpa [#allocation4 + $0x1], 0  ;;  %s1167_s9 = smov 0   ;;  %s1169_s10 = smov 0  }
   0x5   :  { %s1171_s11 = smov 0   ;;  %s1173_s12 = smov 0  }
   0x6   :  { %s1175_s13 = smov 0   ;;  %s1177_s14 = smov 0  }
   0x7 LB: > { %s913_s15 = sadd.s32 4294967295, %s1146_s14   ;;  %s914_s16 = sadd.s32 4294967294, %s1146_s14   ;;  %s1146_s14 = sphi %s1177_s14, %s19_s14   ;;  %s1142_s13 = sphi %s1175_s13, %s1551_s13   ;;  %s1138_s12 = sphi %s1173_s12, %s1550_s12   ;;  %s1134_s11 = sphi %s1171_s11, %s1549_s11   ;;  %s1130_s10 = sphi %s1169_s10, %s1548_s10   ;;  %s1126_s9 = sphi %s1167_s9, %s1547_s9  }
   0x8   : > { %p72_p0 = scmp.ne.s32.totalorder %s1130_s10, %s1126_s9  ;;  %p1201_p1 = scmp.eq.s32.totalorder %s913_s15, 0 }
   0x9   : > { %p1205_p2 = scmp.eq.s32.totalorder %s913_s15, 1  ;;  %p104_p3 = scmp.eq.s32.totalorder %s914_s16, 1 }
   0xa   : > { %s1532_s17 = scalar_select %p1201_p1, 1, 0 }
   0xb   : > { %p1211_p4 = por %p1201_p1, %p72_p0  ;;  %p915_p5 = scmp.ge.s32.totalorder %s1146_s14, 1 }
   0xc   : > { %p1216_p6 = por %p104_p3, %p72_p0  ;;  %p111_p7 = scmp.lt.s32.totalorder %s1146_s14, 3 }
   0xd   : > { %s1534_s19 = scalar_select %p1211_p4, 1, 0 }
   0xe   : > { %s1535_s20 = scalar_select %p1216_p6, 1, 0 }
   0xf   : > { %p1221_p8 = pnand %p915_p5, %p111_p7  ;;  %s31_s22 = sadd.s32 1, %s1142_s13 }
  0x10   : > { %p1235_p12 = scmp.ge.s32.totalorder %s31_s22, 2  ;;  %s59_s25 = sadd.s32 1, %s1134_s11 }
  0x11   : > { %p951_p10 = pneg %p1221_p8  ;;  %p66_p13 = scmp.ne.s32.totalorder %s1134_s11, %s1130_s10 }
  0x12   : > { %p67_p0 = scmp.eq.s32.totalorder %s1146_s14, 0  ;;  %s1017_s28 = scalar_lea.hbm %s1525_s0, 16 }
  0x13   : > { %p1231_p11 = pnand %p951_p10, %p1201_p1  ;;  %p1018_p3 = scmp.ne.s32.totalorder %s1525_s0, %s1017_s28 }
  0x14   : > { %p1024_p9 = scmp.lt.u32.totalorder %s1017_s28, %s1525_s0 }
  0x15   : > { %p1019_p5 = pneg %p1231_p11 }
  0x17   : > { %p1020_p7 = pnand %p1019_p5, %p1018_p3 }
  0x19   : > { %p1021_p10 = pneg %p1020_p7 }
  0x1b   : > { %p1026_p6 = pnand %p1024_p9, %p1021_p10 }
  0x1d   : > { %1029 = shalt.err (!%p1026_p6)
}
  0x1e   : > { %s1148_s5 = smov [#allocation2]   ;;  %s1553_s22 = smov (%p1235_p12, %s31_s22), 0 }
  0x1f   : > { %954 = dma.hbm_to_smem (!%p1231_p11), %s1525_s0, 16, %s1148_s5, [#allocation5]  }
  0x20   : > { %p1266_p6 = por %p67_p0, %p66_p13  ;;  %p1275_p9 = por %p1205_p2, %p66_p13 }
  0x21   : > { %s56_s16 = ssub.s32 %s1142_s13, %s1553_s22  ;;  %p964_p3 = scmp.lt.s32.totalorder %s1146_s14, 2 }
  0x22   : > { %s1540_s15 = scalar_select %p1275_p9, 1, 0 }
  0x23   : > { %p57_p5 = scmp.eq.s32.totalorder %s56_s16, 0  ;;  %s133_s23 = sand.u32 1, %s1134_s11  }
  0x24   : > { %s918_s24 = sshll.u32 %s133_s23, 2  ;;  %s941_s27 = sshll.u32 %s1142_s13, 6 }
  0x25   : > { %s1284_s26 = scalar_select %p57_p5, %s1134_s11, %s59_s25  }
  0x26   : > { %s1290_s30 = scalar_lea.hbm %s1526_s1, %s941_s27  ;;  %s137_s18 = scalar_lea.vmem [#allocation6], %s918_s24 }
  0x27   : > { %s145_s3 = sshll.u32 %s137_s18, 4  ;;  %p1296_p2 = pnand %p964_p3, %p1266_p6  ;;  %s1292_s3 = int_to_ptr.vmem [resolvable:$true] %s145_s3 }
  0x28   : > { %s134_s25 = scalar_lea.sflag [#allocation3], %s133_s23  ;;  %s1030_s5 = scalar_lea.hbm %s1290_s30, 64 }
  0x29   : > { %p1031_p11 = scmp.ne.s32.totalorder %s1290_s30, %s1030_s5  ;;  %p1032_p12 = pneg %p1296_p2 }
  0x2a   : > { %s1035_s16 = scalar_lea.hbm %s1526_s1, 128  ;;  %p1036_p7 = scmp.lt.u32.totalorder %s1290_s30, %s1526_s1 }
  0x2b   : > { %p1033_p13 = pnand %p1032_p12, %p1031_p11  ;;  %p1037_p10 = scmp.lt.u32.totalorder %s1035_s16, %s1030_s5 }
  0x2c   : > { %p1039_p3 = scmp.lt.u32.totalorder %s1030_s5, %s1290_s30 }
  0x2d   : > { %p1034_p0 = pneg %p1033_p13  ;;  %p1038_p6 = por %p1037_p10, %p1036_p7 }
  0x2f   : > { %p1040_p5 = por %p1039_p3, %p1038_p6 }
  0x31   : > { %p1041_p9 = pnand %p1040_p5, %p1034_p0 }
  0x33   : > { %1044 = shalt.err (!%p1041_p9)
}
  0x34   : > { %s1045_s23 = scalar_lea.vmem %s1292_s3, 64  ;;  %s1149_s27 = smov [#allocation6]  }
  0x35   : > { %p1046_p11 = scmp.ne.s32.totalorder %s1292_s3, %s1045_s23  ;;  %s1050_s28 = sshll.u32 %s1149_s27, 4  ;;  %s1051_s28 = int_to_ptr.vmem [resolvable:$false] %s1050_s28 }
  0x36   : > { %s1052_s29 = scalar_lea.vmem %s1051_s28, 128  ;;  %p1053_p1 = scmp.lt.s32.totalorder %s1292_s3, %s1051_s28 }
  0x37   : > { %p1048_p13 = pnand %p1046_p11, %p1032_p12  ;;  %p1054_p7 = scmp.lt.s32.totalorder %s1052_s29, %s1045_s23 }
  0x39   : > { %p1049_p4 = pneg %p1048_p13  ;;  %p1055_p10 = por %p1054_p7, %p1053_p1 }
  0x3b   : > { %p1056_p6 = pnand %p1055_p10, %p1049_p4 }
  0x3d   : > { %1059 = shalt.err (!%p1056_p6)
}
  0x3e   : > { %958 = dma.hbm_to_vmem [thread:$0]  (!%p1296_p2), %s1290_s30, 64, %s1292_s3, %s134_s25  }
  0x3f   : > { %154 = sbr.rel (%p1221_p8) target bundleno = 410 (0x19a), region = 28  ;;  %p1542_p9 = scmp.ne.s32.totalorder (!%p1221_p8), %s1532_s17, 0 }
  0x46   : > { %1113 = dma.done.wait (%p1542_p9), [#allocation5], 16  }
  0x47   : > { %1115 = vsyncadd (%p1542_p9), [#allocation5], 4294967280  ;;  %s1332_s18 = sand.u32 1, %s1130_s10   ;;  %p1543_p1 = scmp.ne.s32.totalorder %s1534_s19, 0 }
  0x48   : > { %s923_s5 = sshll.u32 %s1332_s18, 2  ;;  %s161_s4 = scalar_lea.sflag [#allocation3], %s1332_s18 }
  0x49   : > { %s164_s6 = scalar_lea.vmem [#allocation6], %s923_s5 }
  0x4a   : > { %1117 = dma.done.wait (%p1543_p1), %s161_s4, 64  }
  0x4b   : > { %1119 = vsyncadd (%p1543_p1), %s161_s4, 4294967232 }
  0x4c   : > { %169 = sfence }
  0x4d   : > { %v188_v0 = vlaneseq  ;;  %s207_s21 = smul.u32 6, %s1138_s12  ;;  %v1341_v1 = vld.sshfl [vmem:[%s164_s6] sm:$0x33 pattern:$0x76325410]  ;;  %s924_s28 = sshll.u32 %s1332_s18, 3 }
  0x4e   : > { %v754_v3 = vcombine.high %v1341_v1, %v1341_v1  ;;  %v1150_v20 = vmov 1966171168   ;;  %s942_s29 = sshll.u32 %s1138_s12, 7  ;;  %s185_s5 = scalar_lea.vmem [#allocation7], %s924_s28 }
  0x4f   : > { %v189_v2 = vand.u32 127, %v188_v0  ;;  %s208_s17 = sld [smem:[#allocation2 + %s207_s21]]  ;;  %s209_s30 = sadd.s32 1, %s207_s21  ;;  %v1347_v11 = vshrl.u32 %v188_v0, 7  ;;  %v282_v21 = vunpack.c.l.s4 %v1150_v20 }
  0x50   : > { %s210_s3 = sld [smem:[#allocation2 + %s209_s30]]  ;;  %s211_s25 = sadd.s32 2, %s207_s21  ;;  %789 = vmatprep.mubr.bf16.mxu0 %v754_v3 }
  0x51   : > { %v190_v4 = vadd.s32 128, %v189_v2  ;;  %v194_v5 = vshra.s32 %v189_v2, 4  ;;  %v196_v6 = vand.u32 15, %v189_v2  ;;  %s1345_s7 = sld [smem:[#allocation2 + %s211_s25]]  ;;  %s213_s19 = sadd.s32 3, %s207_s21  ;;  %v204_v22 = vadd.s32 8, %v1347_v11 }
  0x52   : > { %s214_s16 = sld [smem:[#allocation2 + %s213_s19]]  ;;  %s215_s8 = sadd.s32 4, %s207_s21  ;;  %v205_v23 = vcvt.s32.f32 %v1347_v11  ;;  %v283_v37 = vunpack.c.0.s8 %v282_v21 }
  0x53   : > { %v195_v7 = vshra.s32 %v190_v4, 4  ;;  %v197_v8 = vand.u32 15, %v190_v4  ;;  %v198_v9 = vcvt.s32.f32 %v194_v5  ;;  %v200_v10 = vcvt.s32.f32 %v196_v6  ;;  %s216_s24 = sld [smem:[#allocation2 + %s215_s8]]  ;;  %s217_s23 = sadd.s32 5, %s207_s21 }
  0x54   : > { %s1349_s27 = sld [smem:[#allocation2 + %s217_s23]]  ;;  %v206_v35 = vcvt.s32.f32 %v204_v22  ;;  %v1356_v48 = vsub.s32 %v283_v37, %v1347_v11  ;;  %s820_s4 = sshll.u32 %s185_s5, 4  ;;  %s1478_s4 = int_to_ptr.vmem [resolvable:$true] %s820_s4 }
  0x55   : > { %v199_v12 = vcvt.s32.f32 %v195_v7  ;;  %v201_v13 = vcvt.s32.f32 %v197_v8  ;;  %v219_v14 = vstv %s208_s17  ;;  %s1476_s17 = scalar_lea.hbm %s1527_s2, %s942_s29  ;;  %s804_s30 = scalar_lea.sflag [#allocation4], %s1332_s18 }
  0x56   : > { %v220_v15 = vmul.f32 %v219_v14, %v198_v9  ;;  %v222_v16 = vstv %s210_s3  ;;  %s1060_s12 = scalar_lea.vmem %s1478_s4, 128  ;;  %p1544_p8 = scmp.ne.s32.totalorder %s1540_s15, 0 }
  0x57   : > { %v221_v17 = vmul.f32 %v219_v14, %v199_v12  ;;  %v223_v18 = vmul.f32 %v222_v16, %v200_v10  ;;  %v224_v19 = vmul.f32 %v222_v16, %v201_v13  ;;  %v227_v24 = vstv %s1345_s7  ;;  %p1061_p4 = scmp.ne.s32.totalorder %s1478_s4, %s1060_s12  ;;  %s1151_s3 = smov [#allocation7]  }
  0x58   : > { %v230_v25 = vstv %s214_s16  ;;  %s1064_s25 = sshll.u32 %s1151_s3, 4  ;;  %s1065_s25 = int_to_ptr.vmem [resolvable:$false] %s1064_s25 }
  0x59   : > { %v225_v26 = vadd.f32 %v223_v18, %v220_v15  ;;  %v226_v27 = vadd.f32 %v224_v19, %v221_v17  ;;  %v231_v28 = vmul.f32 %v230_v25, %v198_v9  ;;  %v232_v29 = vmul.f32 %v230_v25, %v199_v12  ;;  %p1062_p2 = pnand %p1061_p4, %p1544_p8  ;;  %s1066_s7 = scalar_lea.vmem %s1065_s25, 256 }
  0x5a   : > { %v233_v30 = vstv %s216_s24  ;;  %v238_v36 = vstv %s1349_s27  ;;  %v1361_v17 = vsub.s32 0, %v1347_v11  ;;  %v1364_v18 = vsub.s32 1, %v1347_v11  ;;  %p1067_p0 = scmp.lt.s32.totalorder %s1478_s4, %s1065_s25  ;;  %p1068_p3 = scmp.lt.s32.totalorder %s1066_s7, %s1060_s12 }
  0x5b   : > { %v228_v31 = vadd.f32 %v227_v24, %v225_v26  ;;  %v229_v32 = vadd.f32 %v227_v24, %v226_v27  ;;  %v234_v33 = vmul.f32 %v233_v30, %v200_v10  ;;  %v235_v34 = vmul.f32 %v233_v30, %v201_v13  ;;  %p1063_p12 = pneg %p1062_p2 }
  0x5c   : > { %p1069_p5 = por %p1068_p3, %p1067_p0 }
  0x5d   : > { %v236_v38 = vadd.f32 %v234_v33, %v231_v28  ;;  %v237_v39 = vadd.f32 %v235_v34, %v232_v29  ;;  %v241_v40 = vsub.f32 %v228_v31, %v205_v23  ;;  %v242_v41 = vsub.f32 %v229_v32, %v205_v23 }
  0x5e   : > { %v243_v42 = vsub.f32 %v228_v31, %v206_v35  ;;  %v244_v43 = vsub.f32 %v229_v32, %v206_v35  ;;  %p1070_p11 = pnand %p1069_p5, %p1063_p12 }
  0x5f   : > { %v239_v44 = vadd.f32 %v238_v36, %v236_v38  ;;  %v240_v45 = vadd.f32 %v238_v36, %v237_v39  ;;  %v245_v46 = vand.u32 2147483647, %v241_v40  ;;  %v246_v47 = vand.u32 2147483647, %v242_v41 }
  0x60   : > { %v247_v49 = vand.u32 2147483647, %v243_v42  ;;  %v248_v50 = vand.u32 2147483647, %v244_v43 }
  0x61   : > { %v249_v51 = vsub.f32 1.0, %v245_v46  ;;  %v250_v52 = vsub.f32 1.0, %v246_v47  ;;  %v259_v53 = vsub.f32 %v239_v44, %v205_v23  ;;  %v260_v54 = vsub.f32 %v240_v45, %v205_v23 }
  0x62   : > { %v261_v55 = vsub.f32 %v239_v44, %v206_v35  ;;  %v262_v56 = vsub.f32 %v240_v45, %v206_v35  ;;  %v251_v57 = vsub.f32 1.0, %v247_v49  ;;  %v252_v58 = vsub.f32 1.0, %v248_v50 }
  0x63   : > { %v253_v59 = vmax.f32 %v249_v51, 0.0  ;;  %v254_v60 = vmax.f32 %v250_v52, 0.0  ;;  %v263_v61 = vand.u32 2147483647, %v259_v53  ;;  %v264_v62 = vand.u32 2147483647, %v260_v54 }
  0x64   : > { %v265_v63 = vand.u32 2147483647, %v261_v55  ;;  %v266_v0 = vand.u32 2147483647, %v262_v56  ;;  %v255_v8 = vmax.f32 %v251_v57, 0.0  ;;  %v256_v9 = vmax.f32 %v252_v58, 0.0 }
  0x65   : > { %v267_v2 = vsub.f32 1.0, %v263_v61  ;;  %v268_v3 = vsub.f32 1.0, %v264_v62  ;;  %v925_v4 = vpack.c.bf16 %v254_v60, %v253_v59 }
  0x66   : > { %v269_v5 = vsub.f32 1.0, %v265_v63  ;;  %v270_v6 = vsub.f32 1.0, %v266_v0  ;;  %v926_v25 = vpack.c.bf16 %v256_v9, %v255_v8 }
  0x67   : > { %v287_v7 = vrot.slane %v925_v4, %v1356_v48  ;;  %v271_v10 = vmax.f32 %v267_v2, 0.0  ;;  %v272_v12 = vmax.f32 %v268_v3, 0.0 }
  0x68   : > { %v273_v13 = vmax.f32 %v269_v5, 0.0  ;;  %v274_v14 = vmax.f32 %v270_v6, 0.0  ;;  %v294_v58 = vrot.slane %v926_v25, %v1356_v48 }
  0x69   : > { %v295_v15 = vcombine.high %v287_v7, %v287_v7  ;;  %v303_v16 = vrot.slane %v287_v7, %v1356_v48 }
  0x6a   : > { %v1367_v23 = vpack.c.bf16 %v273_v13, %v271_v10  ;;  %v1369_v24 = vpack.c.bf16 %v274_v14, %v272_v12  ;;  %v310_v7 = vrot.slane %v294_v58, %v1356_v48 }
  0x6b   : > { %v927_v19 = vpack.i.b16 %v303_v16, %v303_v16  ;;  %v330_v20 = vunpack.i.h.s16 %v303_v16  ;;  %v317_v21 = vrot.slane %v295_v15, %v1356_v48  ;;  %v325_v22 = vcombine.high %v303_v16, %v303_v16 }
  0x6d   : > { %v368_v26 = vrot.slane %v927_v19, %v1364_v18  ;;  %v364_v27 = vrot.slane %v927_v19, %v1361_v17  ;;  %v346_v28 = vpack.i.b16 %v330_v20, %v330_v20  ;;  %v928_v29 = vpack.i.b16 %v317_v21, %v317_v21 }
  0x6e   : > { %v332_v30 = vunpack.i.h.s16 %v317_v21  ;;  %v929_v31 = vpack.i.b16 %v325_v22, %v325_v22  ;;  %v334_v11 = vunpack.i.h.s16 %v325_v22  ;;  %v327_v32 = vcombine.high %v317_v21, %v317_v21 }
  0x6f   : > { %v497_v33 = vpack.i.b16 %v368_v26, %v368_v26  ;;  %v490_v34 = vpack.i.b16 %v364_v27, %v364_v27  ;;  %v376_v35 = vrot.slane %v346_v28, %v1364_v18  ;;  %v372_v36 = vrot.slane %v346_v28, %v1361_v17 }
  0x70   : > { %v384_v37 = vrot.slane %v928_v29, %v1364_v18  ;;  %v380_v38 = vrot.slane %v928_v29, %v1361_v17  ;;  %v348_v39 = vpack.i.b16 %v332_v30, %v332_v30  ;;  %v400_v40 = vrot.slane %v929_v31, %v1364_v18 }
  0x71   : > { %v502_v41 = vrot.slane %v497_v33, %v1361_v17  ;;  %v495_v42 = vrot.slane %v490_v34, %v1361_v17  ;;  %v511_v43 = vpack.i.b16 %v376_v35, %v376_v35  ;;  %v504_v44 = vpack.i.b16 %v372_v36, %v372_v36 }
  0x72   : > { %v525_v45 = vpack.i.b16 %v384_v37, %v384_v37  ;;  %v518_v46 = vpack.i.b16 %v380_v38, %v380_v38  ;;  %v392_v47 = vrot.slane %v348_v39, %v1364_v18  ;;  %v388_v49 = vrot.slane %v348_v39, %v1361_v17 }
  0x73   : > { %v714_v50 = vmul.bf16 %v502_v41, %v1369_v24  ;;  %v713_v51 = vmul.bf16 %v495_v42, %v1367_v23  ;;  %v516_v52 = vrot.slane %v511_v43, %v1361_v17  ;;  %v509_v53 = vrot.slane %v504_v44, %v1361_v17 }
  0x74   : > { %v530_v54 = vrot.slane %v525_v45, %v1361_v17  ;;  %v539_v55 = vpack.i.b16 %v392_v47, %v392_v47  ;;  %v523_v57 = vrot.slane %v518_v46, %v1361_v17  ;;  %v532_v60 = vpack.i.b16 %v388_v49, %v388_v49 }
  0x75   : > { %757 = vmatprep.subr.bf16.mxu0 %v714_v50  ;;  %v716_v56 = vmul.bf16 %v516_v52, %v1369_v24  ;;  %v715_v59 = vmul.bf16 %v509_v53, %v1367_v23  ;;  %v553_v61 = vpack.i.b16 %v400_v40, %v400_v40  ;;  %v396_v62 = vrot.slane %v929_v31, %v1361_v17 }
  0x76   : > { %758 = vmatpush1.bf16.msra.mxu0 %v713_v51  ;;  %v718_v63 = vmul.bf16 %v530_v54, %v1369_v24  ;;  %v544_v0 = vrot.slane %v539_v55, %v1361_v17  ;;  %v350_v2 = vpack.i.b16 %v334_v11, %v334_v11  ;;  %v930_v3 = vpack.i.b16 %v327_v32, %v327_v32 }
  0x77   : > { %759 = vmatprep.subr.bf16.mxu0 %v716_v56  ;;  %v336_v4 = vunpack.i.h.s16 %v327_v32  ;;  %v717_v5 = vmul.bf16 %v523_v57, %v1367_v23  ;;  %v537_v8 = vrot.slane %v532_v60, %v1361_v17  ;;  %v558_v9 = vrot.slane %v553_v61, %v1361_v17 }
  0x78   : > { %v408_v6 = vrot.slane %v350_v2, %v1364_v18  ;;  %v546_v10 = vpack.i.b16 %v396_v62, %v396_v62  ;;  %v404_v12 = vrot.slane %v350_v2, %v1361_v17  ;;  %v720_v13 = vmul.bf16 %v544_v0, %v1369_v24 }
  0x79   : > { %v416_v15 = vrot.slane %v930_v3, %v1364_v18  ;;  %v352_v16 = vpack.i.b16 %v336_v4, %v336_v4  ;;  %v931_v19 = vpack.i.b16 %v310_v7, %v310_v7  ;;  %v338_v20 = vunpack.i.h.s16 %v310_v7 }
  0x7a   : > { %760 = vmatpush1.bf16.msra.mxu0 %v715_v59  ;;  %v567_v14 = vpack.i.b16 %v408_v6, %v408_v6  ;;  %v296_v21 = vcombine.high %v294_v58, %v294_v58  ;;  %v719_v22 = vmul.bf16 %v537_v8, %v1367_v23  ;;  %v551_v25 = vrot.slane %v546_v10, %v1361_v17 }
  0x7b   : > { %761 = vmatprep.subr.bf16.mxu0 %v718_v63  ;;  %v560_v26 = vpack.i.b16 %v404_v12, %v404_v12  ;;  %v412_v27 = vrot.slane %v930_v3, %v1361_v17  ;;  %v722_v28 = vmul.bf16 %v558_v9, %v1369_v24  ;;  %v581_v30 = vpack.i.b16 %v416_v15, %v416_v15 }
  0x7c   : > { %v572_v29 = vrot.slane %v567_v14, %v1361_v17  ;;  %v424_v31 = vrot.slane %v352_v16, %v1364_v18  ;;  %v432_v11 = vrot.slane %v931_v19, %v1364_v18  ;;  %v324_v32 = vrot.slane %v296_v21, %v1356_v48 }
  0x7d   : > { %v721_v33 = vmul.bf16 %v551_v25, %v1367_v23  ;;  %v565_v34 = vrot.slane %v560_v26, %v1361_v17  ;;  %v574_v35 = vpack.i.b16 %v412_v27, %v412_v27  ;;  %v420_v36 = vrot.slane %v352_v16, %v1361_v17 }
  0x7e   : > { %762 = vmatpush1.bf16.msra.mxu0 %v717_v5  ;;  %v724_v37 = vmul.bf16 %v572_v29, %v1369_v24  ;;  %v586_v38 = vrot.slane %v581_v30, %v1361_v17  ;;  %v595_v39 = vpack.i.b16 %v424_v31, %v424_v31  ;;  %v354_v40 = vpack.i.b16 %v338_v20, %v338_v20 }
  0x7f   : > { %763 = vmatprep.subr.bf16.mxu0 %v720_v13  ;;  %v609_v41 = vpack.i.b16 %v432_v11, %v432_v11  ;;  %v428_v42 = vrot.slane %v931_v19, %v1361_v17  ;;  %v723_v48 = vmul.bf16 %v565_v34, %v1367_v23  ;;  %v579_v43 = vrot.slane %v574_v35, %v1361_v17 }
  0x80   : > { %v588_v44 = vpack.i.b16 %v420_v36, %v420_v36  ;;  %v932_v45 = vpack.i.b16 %v324_v32, %v324_v32  ;;  %v726_v46 = vmul.bf16 %v586_v38, %v1369_v24  ;;  %v600_v47 = vrot.slane %v595_v39, %v1361_v17 }
  0x81   : > { %v440_v49 = vrot.slane %v354_v40, %v1364_v18  ;;  %v340_v50 = vunpack.i.h.s16 %v324_v32  ;;  %v602_v51 = vpack.i.b16 %v428_v42, %v428_v42  ;;  %v326_v52 = vcombine.high %v310_v7, %v310_v7 }
  0x82   : > { %764 = vmatpush1.bf16.msra.mxu0 %v719_v22  ;;  %v725_v53 = vmul.bf16 %v579_v43, %v1367_v23  ;;  %v593_v54 = vrot.slane %v588_v44, %v1361_v17  ;;  %v436_v55 = vrot.slane %v354_v40, %v1361_v17  ;;  %v448_v56 = vrot.slane %v932_v45, %v1364_v18 }
  0x83   : > { %765 = vmatprep.subr.bf16.mxu0 %v722_v28  ;;  %v728_v57 = vmul.bf16 %v600_v47, %v1369_v24  ;;  %v614_v58 = vrot.slane %v609_v41, %v1361_v17  ;;  %v623_v59 = vpack.i.b16 %v440_v49, %v440_v49  ;;  %v356_v60 = vpack.i.b16 %v340_v50, %v340_v50 }
  0x84   : > { %v607_v61 = vrot.slane %v602_v51, %v1361_v17  ;;  %v933_v62 = vpack.i.b16 %v326_v52, %v326_v52  ;;  %v727_v63 = vmul.bf16 %v593_v54, %v1367_v23  ;;  %v616_v0 = vpack.i.b16 %v436_v55, %v436_v55 }
  0x85   : > { %v637_v2 = vpack.i.b16 %v448_v56, %v448_v56  ;;  %v444_v3 = vrot.slane %v932_v45, %v1361_v17  ;;  %v730_v4 = vmul.bf16 %v614_v58, %v1369_v24  ;;  %v628_v5 = vrot.slane %v623_v59, %v1361_v17 }
  0x86   : > { %766 = vmatpush1.bf16.msra.mxu0 %v721_v33  ;;  %v456_v6 = vrot.slane %v356_v60, %v1364_v18  ;;  %v342_v7 = vunpack.i.h.s16 %v326_v52  ;;  %v729_v8 = vmul.bf16 %v607_v61, %v1367_v23  ;;  %v464_v9 = vrot.slane %v933_v62, %v1364_v18 }
  0x87   : > { %767 = vmatprep.subr.bf16.mxu0 %v724_v37  ;;  %v621_v10 = vrot.slane %v616_v0, %v1361_v17  ;;  %v642_v12 = vrot.slane %v637_v2, %v1361_v17  ;;  %v630_v13 = vpack.i.b16 %v444_v3, %v444_v3  ;;  %v452_v14 = vrot.slane %v356_v60, %v1361_v17 }
  0x88   : > { %v732_v15 = vmul.bf16 %v628_v5, %v1369_v24  ;;  %v651_v16 = vpack.i.b16 %v456_v6, %v456_v6  ;;  %v358_v19 = vpack.i.b16 %v342_v7, %v342_v7  ;;  %v328_v20 = vcombine.high %v324_v32, %v324_v32 }
  0x89   : > { %v665_v21 = vpack.i.b16 %v464_v9, %v464_v9  ;;  %v460_v22 = vrot.slane %v933_v62, %v1361_v17  ;;  %v731_v25 = vmul.bf16 %v621_v10, %v1367_v23  ;;  %v734_v26 = vmul.bf16 %v642_v12, %v1369_v24 }
  0x8a   : > { %768 = vmatpush1.bf16.msra.mxu0 %v723_v48  ;;  %v635_v27 = vrot.slane %v630_v13, %v1361_v17  ;;  %v644_v28 = vpack.i.b16 %v452_v14, %v452_v14  ;;  %v656_v29 = vrot.slane %v651_v16, %v1361_v17  ;;  %v472_v30 = vrot.slane %v358_v19, %v1364_v18 }
  0x8b   : > { %769 = vmatprep.subr.bf16.mxu0 %v726_v46  ;;  %v934_v31 = vpack.i.b16 %v328_v20, %v328_v20  ;;  %v344_v11 = vunpack.i.h.s16 %v328_v20  ;;  %v658_v33 = vpack.i.b16 %v460_v22, %v460_v22  ;;  %v670_v35 = vrot.slane %v665_v21, %v1361_v17 }
  0x8c   : > { %v733_v32 = vmul.bf16 %v635_v27, %v1367_v23  ;;  %v649_v34 = vrot.slane %v644_v28, %v1361_v17  ;;  %v468_v36 = vrot.slane %v358_v19, %v1361_v17  ;;  %v736_v37 = vmul.bf16 %v656_v29, %v1369_v24 }
  0x8d   : > { %v679_v38 = vpack.i.b16 %v472_v30, %v472_v30  ;;  %v480_v39 = vrot.slane %v934_v31, %v1364_v18  ;;  %v360_v40 = vpack.i.b16 %v344_v11, %v344_v11  ;;  %v663_v42 = vrot.slane %v658_v33, %v1361_v17 }
  0x8e   : > { %770 = vmatpush1.bf16.msra.mxu0 %v725_v53  ;;  %v735_v41 = vmul.bf16 %v649_v34, %v1367_v23  ;;  %v672_v48 = vpack.i.b16 %v468_v36, %v468_v36  ;;  %v476_v43 = vrot.slane %v934_v31, %v1361_v17  ;;  %v738_v44 = vmul.bf16 %v670_v35, %v1369_v24 }
  0x8f   : > { %771 = vmatprep.subr.bf16.mxu0 %v728_v57  ;;  %v684_v45 = vrot.slane %v679_v38, %v1361_v17  ;;  %v693_v46 = vpack.i.b16 %v480_v39, %v480_v39  ;;  %v488_v47 = vrot.slane %v360_v40, %v1364_v18  ;;  %v737_v49 = vmul.bf16 %v663_v42, %v1367_v23 }
  0x90   : > { %v677_v50 = vrot.slane %v672_v48, %v1361_v17  ;;  %v686_v51 = vpack.i.b16 %v476_v43, %v476_v43  ;;  %v484_v52 = vrot.slane %v360_v40, %v1361_v17 }
  0x91   : > { %v740_v53 = vmul.bf16 %v684_v45, %v1369_v24  ;;  %v698_v54 = vrot.slane %v693_v46, %v1361_v17  ;;  %v707_v55 = vpack.i.b16 %v488_v47, %v488_v47 }
  0x92   : > { %772 = vmatpush1.bf16.msra.mxu0 %v727_v63  ;;  %v739_v56 = vmul.bf16 %v677_v50, %v1367_v23  ;;  %v691_v18 = vrot.slane %v686_v51, %v1361_v17  ;;  %v700_v57 = vpack.i.b16 %v484_v52, %v484_v52 }
  0x93   : > { %773 = vmatprep.subr.bf16.mxu0 %v730_v4  ;;  %v742_v58 = vmul.bf16 %v698_v54, %v1369_v24  ;;  %v712_v59 = vrot.slane %v707_v55, %v1361_v17 }
  0x94   : > { %v741_v60 = vmul.bf16 %v691_v18, %v1367_v23  ;;  %v705_v61 = vrot.slane %v700_v57, %v1361_v17 }
  0x95   : > { %v744_v62 = vmul.bf16 %v712_v59, %v1369_v24 }
  0x96   : > { %774 = vmatpush1.bf16.msra.mxu0 %v729_v8  ;;  %v743_v63 = vmul.bf16 %v705_v61, %v1367_v23 }
  0x97   : > { %775 = vmatprep.subr.bf16.mxu0 %v732_v15 }
  0x9a   : > { %776 = vmatpush1.bf16.msra.mxu0 %v731_v25 }
  0x9b   : > { %777 = vmatprep.subr.bf16.mxu0 %v734_v26 }
  0x9e   : > { %778 = vmatpush1.bf16.msra.mxu0 %v733_v32 }
  0x9f   : > { %779 = vmatprep.subr.bf16.mxu0 %v736_v37 }
  0xa2   : > { %780 = vmatpush1.bf16.msra.mxu0 %v735_v41 }
  0xa3   : > { %781 = vmatprep.subr.bf16.mxu0 %v738_v44 }
  0xa6   : > { %782 = vmatpush1.bf16.msra.mxu0 %v737_v49 }
  0xa7   : > { %783 = vmatprep.subr.bf16.mxu0 %v740_v53 }
  0xaa   : > { %784 = vmatpush1.bf16.msra.mxu0 %v739_v56 }
  0xab   : > { %785 = vmatprep.subr.bf16.mxu0 %v742_v58 }
  0xae   : > { %786 = vmatpush1.bf16.msra.mxu0 %v741_v60 }
  0xaf   : > { %787 = vmatprep.subr.bf16.mxu0 %v744_v62 }
  0xb2   : > { %788 = vmatpush1.bf16.msra.mxu0 %v743_v63 }
  0xb5   : > { %790 = vmatmul.mubr.bf16.vlgmr.msra.gmra.mrb[0].mxu0 %v1341_v1 }
 0x188   : > { %v791_v0 = vpop.f32.mrb[0].mxu0 }
 0x189   : > { %v793_v2 = vpop.f32.mrb[1].mxu0 }
 0x18a   : > { %v800_v3 = vcombine.low %v791_v0, %v793_v2  ;;  %v795_v17 = vpop.f32.mrb[2].mxu0 }
 0x18b   : > { %v796_v1 = vpop.f32.mrb[3].mxu0 }
 0x18c   : > { %802 = vst [vmem:[%s185_s5] sm:$0xff] %v800_v3 }
 0x18d   : > { %1073 = shalt.err (!%p1070_p11)
}
 0x18e   : > { %s1074_s18 = scalar_lea.hbm %s1476_s17, 128  ;;  %s1078_s8 = scalar_lea.hbm %s1527_s2, 256 }
 0x18f   : > { %p1075_p13 = scmp.ne.s32.totalorder %s1476_s17, %s1074_s18  ;;  %p1079_p6 = scmp.lt.u32.totalorder %s1476_s17, %s1527_s2 }
 0x190   : > { %p1080_p9 = scmp.lt.u32.totalorder %s1078_s8, %s1074_s18  ;;  %p1082_p4 = scmp.lt.u32.totalorder %s1074_s18, %s1476_s17 }
 0x191   : > { %p1076_p7 = pnand %p1075_p13, %p1544_p8 }
 0x192   : > { %p1081_p1 = por %p1080_p9, %p1079_p6 }
 0x193   : > { %p1077_p10 = pneg %p1076_p7 }
 0x194   : > { %p1083_p2 = por %p1082_p4, %p1081_p1 }
 0x196   : > { %p1084_p12 = pnand %p1083_p2, %p1077_p10 }
 0x198   : > { %1087 = shalt.err (!%p1084_p12)
}
 0x199   : > { %949 = dma.vmem_to_hbm [thread:$0]  (%p1544_p8), %s1478_s4, 128, %s1476_s17, %s804_s30  }
 0x19a PF: > { %s832_s27 = sand.u32 1, %s1126_s9   ;;  %p1545_p0 = scmp.ne.s32.totalorder %s1535_s20, 0 }
 0x19b   : > { %p1546_p3 = scmp.ge.s32.totalorder %s1146_s14, 2  ;;  %s833_s28 = scalar_lea.sflag [#allocation4], %s832_s27 }
 0x19d   : > { %p960_p5 = pnand %p1546_p3, %p1545_p0 }
 0x19f   : > { %1121 = dma.done.wait (!%p960_p5), %s833_s28, 128  }
 0x1a0   : > { %1123 = vsyncadd (!%p960_p5), %s833_s28, 4294967168  ;;  %s19_s14 = sadd.s32 1, %s1146_s14   ;;  %s1547_s9 = smov %s1130_s10 }
 0x1a1   : > { %p16_p11 = scmp.ge.s32.totalorder %s19_s14, 4   ;;  %s1548_s10 = smov %s1134_s11 }
 0x1a2   : > { %s1549_s11 = smov %s1284_s26  ;;  %s1550_s12 = smov %s1142_s13 }
 0x1a3   : > { %s1551_s13 = smov %s1553_s22  ;;  %18 = sbr.rel (!%p16_p11) target bundleno = 7 (0x7), region = 78 }
 0x1aa   :  { %838 = vsyncpa [#allocation3], 1 }
 0x1ab   :  { %840 = vsyncpa [#allocation3 + $0x1], 1 }
 0x1ac   :  { %841 = vsyncpa [#allocation4], 1 }
 0x1ad   :  { %843 = vsyncpa [#allocation4 + $0x1], 1 }
 0x1ae   :  { %844 = vsyncpa [#allocation5], 1 }
 0x1af   :  { %846 = vsyncpa [#allocation5 + $0x1], 1 }

</bundles_post_ra>
